<compile_context>
chip_gen: v5e
topology: v5e:2x2
jax: 0.10.0
libtpu: 0.0.40
codegen_flags: <defaults>
</compile_context>

<pallas_src>
import functools
import math

import jax
import jax.numpy as jnp
from jax.experimental import pallas as pl
from jax.experimental.pallas import tpu as pltpu


def _round_up(v, m):
    return (v + m - 1) // m * m


def _tpu_generation_params():
    """Returns (target_block_f32_bytes, vmem_limit_cap_bytes, prefix_overhead)."""
    vmem_cap = 64 << 20  # conservative default (v7x-class)
    try:
        info = pltpu.get_tpu_info()
        cap = getattr(info, "vmem_capacity_bytes", None)
        if cap:
            vmem_cap = int(cap)
    except Exception:
        pass
    small_vmem = vmem_cap <= (80 << 20)  # v7x-class: 64 MiB/TC, ~3.2 TB/s HBM
    if small_vmem:
        # Keep blocks ~1 MiB and the scoped budget well under 64 MiB; the high
        # HBM bandwidth leaves little VPU slack -> switch to the prefix-scan
        # path earlier (lower overhead constant in the crossover).
        return (1 << 20), min(48 << 20, vmem_cap * 3 // 4), 6
    # v5e / v6e: 128 MiB physical VMEM and slower HBM -> bigger blocks are free.
    return (2 << 20), min(96 << 20, vmem_cap * 3 // 4), 12


def _compiler_params(blk_in_bytes, blk_out_bytes, blk_f32_bytes, vmem_cap_limit,
                     grid_rank):
    # double-buffered input + two double-buffered outputs + live f32 temporaries
    need = 2 * blk_in_bytes + 4 * blk_out_bytes + 10 * blk_f32_bytes + (2 << 20)
    vmem_limit = int(min(vmem_cap_limit, max(need, 32 << 20)))
    return pltpu.CompilerParams(
        dimension_semantics=("parallel",) * grid_rank,
        vmem_limit_bytes=vmem_limit)


# --------------------------------------------------------------------------
# Kernels
# --------------------------------------------------------------------------
def _decomp_rows_kernel(x_ref, res_ref, mean_ref, *, kernel_size, out_rows,
                        use_prefix):
    """Block layout [Lp, Ct]: moving average along axis 0 (length on sublanes).

    Rows >= out_rows (if any) are wrapper-added replicas of the last real row,
    so clamping at row Lp-1 is value-equivalent to clamping at the true last
    row; only the first out_rows rows are written back.
    """
    Lp, _ = x_ref.shape
    pad = (kernel_size - 1) // 2
    inv_k = 1.0 / kernel_size

    x = x_ref[...].astype(jnp.float32)
    if pad == 0:
        mean = x
    else:
        row = jax.lax.broadcasted_iota(jnp.int32, (Lp, 1), 0)
        if not use_prefix:
            # Direct windowed sum with recursively clamped shifts:
            #   u_j[l] = x[min(l + j, Lp-1)],  d_j[l] = x[max(l - j, 0)]
            # 2 rolls (XLU) + 2 selects + 2 adds per tap; masks hoisted; no
            # full-tile edge broadcasts.
            mask_up = row < (Lp - 1)
            mask_dn = row >= 1
            u = x
            d = x
            acc = x
            for _ in range(pad):
                u = jnp.where(mask_up, pltpu.roll(u, shift=Lp - 1, axis=0), u)
                d = jnp.where(mask_dn, pltpu.roll(d, shift=1, axis=0), d)
                acc = acc + u + d
            mean = acc * inv_k
        else:
            # Prefix-sum path (large kernels): Hillis-Steele inclusive scan on
            # the *centered* series (avoids cancellation drift), then
            #   win_sum = S[min(l+pad, Lp-1)] - S[l-pad-1] + n_end*(x[Lp-1]-x[0])
            # (the n_front term vanishes because the centered first row is 0),
            # and mean = win_sum / k + x[0].  Edge rows kept (1, Ct).
            x0 = x[0:1, :]
            xl = x[Lp - 1:Lp, :]
            xc = x - x0
            s = xc
            dist = 1
            while dist < Lp:
                s = s + jnp.where(row >= dist,
                                  pltpu.roll(s, shift=dist, axis=0), 0.0)
                dist *= 2
            total = s[Lp - 1:Lp, :]
            s_up = jnp.where(row < Lp - pad,
                             pltpu.roll(s, shift=(-pad) % Lp, axis=0), total)
            s_dn = jnp.where(row >= pad + 1,
                             pltpu.roll(s, shift=(pad + 1) % Lp, axis=0), 0.0)
            n_end = jnp.maximum(row + pad - (Lp - 1), 0).astype(jnp.float32)
            mean = (s_up - s_dn + n_end * (xl - x0)) * inv_k + x0

    res = x - mean
    mean_ref[...] = mean[:out_rows].astype(mean_ref.dtype)
    res_ref[...] = res[:out_rows].astype(res_ref.dtype)


def _decomp_fused_kernel(x_ref, res_ref, mean_ref, *, kernel_size, length,
                         chans):
    """Block layout [Bt, Np]: columns fuse (length, channel) as l*C + c.

    The moving window along length becomes lane rolls with stride C.  Columns
    >= length*chans (if any) are wrapper zero-padding; valid columns never read
    them and they are not written back (the out block has the true width).
    """
    _, Np = x_ref.shape
    pad = (kernel_size - 1) // 2
    inv_k = 1.0 / kernel_size
    C = chans
    L = length
    out_cols = res_ref.shape[1]

    x = x_ref[...].astype(jnp.float32)
    if pad == 0:
        mean = x
    else:
        col = jax.lax.broadcasted_iota(jnp.int32, (1, Np), 1)
        mask_up = col < (L - 1) * C          # length index l < L-1
        mask_dn = col >= C                   # length index l >= 1
        u = x
        d = x
        acc = x
        for _ in range(pad):
            u = jnp.where(mask_up, pltpu.roll(u, shift=Np - C, axis=1), u)
            d = jnp.where(mask_dn, pltpu.roll(d, shift=C, axis=1), d)
            acc = acc + u + d
        mean = acc * inv_k
    # TODO(synk): add a prefix-scan variant for this fused (C < 128) layout for
    # very large kernel_size (needs per-channel edge broadcasts via clamped
    # shift doubling); the direct taps above are fine for the typical k <= ~25.

    res = x - mean
    mean_ref[...] = mean[:, :out_cols].astype(mean_ref.dtype)
    res_ref[...] = res[:, :out_cols].astype(res_ref.dtype)


# --------------------------------------------------------------------------
# Wrappers
# --------------------------------------------------------------------------
def _decomp_rows(x, kernel_size, *, target_block, vmem_cap_limit,
                 prefix_overhead):
    """C >= 128 path: native [B, L, C] blocks, length on sublanes."""
    B, L, C = x.shape
    pad = (kernel_size - 1) // 2
    itemsize = jnp.dtype(x.dtype).itemsize
    sub_q = 8 if itemsize >= 4 else (16 if itemsize == 2 else 32)

    Lp = _round_up(L, sub_q)
    xin = x
    if Lp != L:
        # Replicate-pad the length with the last row: leaves the moving mean of
        # the first L rows unchanged; one cheap pad copy instead of relayouts.
        tail = jnp.broadcast_to(x[:, L - 1:L, :], (B, Lp - L, C))
        xin = jnp.concatenate([x, tail], axis=1)
    # TODO(synk): for extremely long series (Lp * 128 lanes * ~10 f32
    # temporaries beyond the per-generation VMEM budget) tile the length axis
    # with a carried prefix sum / halo instead of a full-length block.

    # Lane tile: multiples of 128 when C divides evenly, otherwise the full
    # channel axis (block dim == array dim is legal; only the last partial
    # 128-lane group is masked on store).
    if C % 128 == 0:
        cap = max(128, (target_block // (Lp * 4)) // 128 * 128)
        ct = min(C, cap)
        while C % ct:
            ct -= 128
    else:
        ct = C
    n_lane = C // ct

    # VPU-op based direct-vs-prefix crossover (chip-gated): direct costs ~4 VPU
    # ops per tap, the scan ~2 per doubling step plus fixed edge math.
    log2_lp = max(1, math.ceil(math.log2(max(Lp, 2))))
    use_prefix = (4 * pad) > (2 * log2_lp + prefix_overhead)

    kernel = functools.partial(_decomp_rows_kernel, kernel_size=kernel_size,
                               out_rows=L, use_prefix=use_prefix)

    blk_in = Lp * ct * itemsize
    blk_out = L * ct * itemsize
    blk_f32 = Lp * ct * 4
    cost = pl.CostEstimate(
        flops=int(B * L * C * (3 * pad + 4)),
        transcendentals=0,
        bytes_accessed=int(3 * B * L * C * itemsize))

    res, mean = pl.pallas_call(
        kernel,
        out_shape=(jax.ShapeDtypeStruct((B, L, C), x.dtype),
                   jax.ShapeDtypeStruct((B, L, C), x.dtype)),
        grid=(B, n_lane),
        in_specs=[pl.BlockSpec((None, Lp, ct), lambda b, c: (b, 0, c))],
        out_specs=(pl.BlockSpec((None, L, ct), lambda b, c: (b, 0, c)),
                   pl.BlockSpec((None, L, ct), lambda b, c: (b, 0, c))),
        compiler_params=_compiler_params(blk_in, blk_out, blk_f32,
                                         vmem_cap_limit, grid_rank=2),
        cost_estimate=cost,
    )(xin)
    return res, mean


def _decomp_fused(x, kernel_size, *, target_block, vmem_cap_limit):
    """C < 128 path: fuse (length, channel) onto the lane axis (free reshape)."""
    B, L, C = x.shape
    pad = (kernel_size - 1) // 2
    itemsize = jnp.dtype(x.dtype).itemsize
    N = L * C
    Np = _round_up(N, 128)

    x2 = x.reshape(B, N)                            # free: trailing dims contiguous
    if Np != N:
        x2 = jnp.pad(x2, ((0, 0), (0, Np - N)))     # zero-pad lane axis only

    # Batch block: a multiple of 8 dividing B when possible (sized to the
    # per-generation block budget); otherwise the full batch (legal block dim).
    if B % 8 == 0:
        cap_rows = max(8, (target_block // (Np * 4)) // 8 * 8)
        bt = min(B, cap_rows)
        while B % bt:
            bt -= 8
    else:
        bt = B

    kernel = functools.partial(_decomp_fused_kernel, kernel_size=kernel_size,
                               length=L, chans=C)

    blk_in = bt * Np * itemsize
    blk_out = bt * N * itemsize
    blk_f32 = bt * Np * 4
    cost = pl.CostEstimate(
        flops=int(B * L * C * (3 * pad + 4)),
        transcendentals=0,
        bytes_accessed=int(3 * B * L * C * itemsize))

    res2, mean2 = pl.pallas_call(
        kernel,
        out_shape=(jax.ShapeDtypeStruct((B, N), x.dtype),
                   jax.ShapeDtypeStruct((B, N), x.dtype)),
        grid=(B // bt,),
        in_specs=[pl.BlockSpec((bt, Np), lambda i: (i, 0))],
        out_specs=(pl.BlockSpec((bt, N), lambda i: (i, 0)),
                   pl.BlockSpec((bt, N), lambda i: (i, 0))),
        compiler_params=_compiler_params(blk_in, blk_out, blk_f32,
                                         vmem_cap_limit, grid_rank=1),
        cost_estimate=cost,
    )(x2)
    return res2.reshape(B, L, C), mean2.reshape(B, L, C)


def series_decomp(x, kernel_size):
    """x: [B, L, C] -> (residual, moving_mean), both [B, L, C].

    kernel_size must be odd (matches how the PyTorch module is used; an even
    kernel would change the reference module's output length).
    """
    assert x.ndim == 3, "expected [Batch, Length, Channel]"
    assert kernel_size >= 1 and kernel_size % 2 == 1, "kernel_size must be odd"
    _, _, C = x.shape
    target_block, vmem_cap_limit, prefix_overhead = _tpu_generation_params()
    if C >= 128:
        return _decomp_rows(x, kernel_size, target_block=target_block,
                            vmem_cap_limit=vmem_cap_limit,
                            prefix_overhead=prefix_overhead)
    return _decomp_fused(x, kernel_size, target_block=target_block,
                         vmem_cap_limit=vmem_cap_limit)


# --------------------------------------------------------------------------
# Pure-JAX reference + self-check
# --------------------------------------------------------------------------
def _reference(x, kernel_size):
    """Mirrors the PyTorch module (computed in f32)."""
    pad = (kernel_size - 1) // 2
    xf = x.astype(jnp.float32)
    front = jnp.repeat(xf[:, 0:1, :], pad, axis=1)
    end = jnp.repeat(xf[:, -1:, :], pad, axis=1)
    xp = jnp.concatenate([front, xf, end], axis=1)
    L = x.shape[1]
    mean = sum(xp[:, j:j + L, :] for j in range(kernel_size)) / kernel_size
    return xf - mean, mean


if __name__ == "__main__":
    key = jax.random.PRNGKey(0)
    configs = [
        # (B, L, C, kernel_size, dtype)
        (2, 16, 8, 5, jnp.float32),     # fused lanes (N=128), direct taps
        (4, 24, 16, 25, jnp.float32),   # fused lanes, window wider than L/2
        (3, 10, 12, 5, jnp.float32),    # fused lanes, N=120 -> zero-pad to 128
        (2, 16, 128, 7, jnp.float32),   # row layout, direct taps
        (2, 20, 160, 9, jnp.float32),   # row layout, L%8!=0 (replicate pad), C%128!=0
        (2, 64, 256, 25, jnp.float32),  # row layout, prefix-scan (centered) path
        (2, 16, 128, 5, jnp.bfloat16),  # row layout, bf16 in/out
    ]
    for i, (B, L, C, k, dt) in enumerate(configs):
        key, sub = jax.random.split(key)
        x = jax.random.normal(sub, (B, L, C), dtype=jnp.float32).astype(dt)

        res, mean = series_decomp(x, k)
        jax.block_until_ready((res, mean))

        res_ref, mean_ref = _reference(x, k)
        atol = 1e-4 if dt == jnp.float32 else 3e-2
        assert res.shape == x.shape and mean.shape == x.shape
        assert res.dtype == x.dtype and mean.dtype == x.dtype
        assert jnp.allclose(mean.astype(jnp.float32), mean_ref, atol=atol), \
            f"moving mean mismatch (cfg {i})"
        assert jnp.allclose(res.astype(jnp.float32), res_ref, atol=atol), \
            f"residual mismatch (cfg {i})"

    print("KERNEL_OK")
</pallas_src>

<mosaic_0001>
module attributes {stable_mosaic.version = 11 : i64} {
  func.func @_decomp_fused_kernel(%arg0: i32, %arg1: memref<2x128xf32, #tpu.memory_space<vmem>>, %arg2: memref<2x128xf32, #tpu.memory_space<vmem>>, %arg3: memref<2x128xf32, #tpu.memory_space<vmem>>) attributes {dimension_semantics = [#tpu.dimension_semantics<parallel>], iteration_bounds = array<i64: 1>, scalar_prefetch = 0 : i64, scratch_operands = 0 : i64, tpu.core_type = #tpu.core_type<tc>, window_params = [{transform_indices = @transform_0, window_bounds = array<i64: 2, 128>}, {transform_indices = @transform_1, window_bounds = array<i64: 2, 128>}, {transform_indices = @transform_2, window_bounds = array<i64: 2, 128>}]} {
    %c0 = arith.constant 0 : index
    %c0_0 = arith.constant 0 : index
    %0 = vector.load %arg1[%c0, %c0_0] : memref<2x128xf32, #tpu.memory_space<vmem>>, vector<2x128xf32>
    %1 = tpu.iota {dimensions = array<i32: 1>} : vector<1x128xi32>
    %c120_i32 = arith.constant 120 : i32
    %2 = vector.broadcast %c120_i32 : i32 to vector<1x128xi32>
    %3 = arith.cmpi slt, %1, %2 : vector<1x128xi32>
    %c8_i32 = arith.constant 8 : i32
    %4 = vector.broadcast %c8_i32 : i32 to vector<1x128xi32>
    %5 = arith.cmpi sge, %1, %4 : vector<1x128xi32>
    %c120_i32_1 = arith.constant 120 : i32
    %6 = tpu.dynamic_rotate %0 by %c120_i32_1 dim 1 : vector<2x128xf32>, i32 -> vector<2x128xf32>
    %7 = vector.shape_cast %3 : vector<1x128xi1> to vector<1x128xi1>
    %8 = vector.broadcast %7 : vector<1x128xi1> to vector<2x128xi1>
    %9 = arith.select %8, %6, %0 : vector<2x128xi1>, vector<2x128xf32>
    %c8_i32_2 = arith.constant 8 : i32
    %10 = tpu.dynamic_rotate %0 by %c8_i32_2 dim 1 : vector<2x128xf32>, i32 -> vector<2x128xf32>
    %11 = vector.shape_cast %5 : vector<1x128xi1> to vector<1x128xi1>
    %12 = vector.broadcast %11 : vector<1x128xi1> to vector<2x128xi1>
    %13 = arith.select %12, %10, %0 : vector<2x128xi1>, vector<2x128xf32>
    %14 = arith.addf %0, %9 : vector<2x128xf32>
    %15 = arith.addf %14, %13 : vector<2x128xf32>
    %c120_i32_3 = arith.constant 120 : i32
    %16 = tpu.dynamic_rotate %9 by %c120_i32_3 dim 1 : vector<2x128xf32>, i32 -> vector<2x128xf32>
    %17 = vector.shape_cast %3 : vector<1x128xi1> to vector<1x128xi1>
    %18 = vector.broadcast %17 : vector<1x128xi1> to vector<2x128xi1>
    %19 = arith.select %18, %16, %9 : vector<2x128xi1>, vector<2x128xf32>
    %c8_i32_4 = arith.constant 8 : i32
    %20 = tpu.dynamic_rotate %13 by %c8_i32_4 dim 1 : vector<2x128xf32>, i32 -> vector<2x128xf32>
    %21 = vector.shape_cast %5 : vector<1x128xi1> to vector<1x128xi1>
    %22 = vector.broadcast %21 : vector<1x128xi1> to vector<2x128xi1>
    %23 = arith.select %22, %20, %13 : vector<2x128xi1>, vector<2x128xf32>
    %24 = arith.addf %15, %19 : vector<2x128xf32>
    %25 = arith.addf %24, %23 : vector<2x128xf32>
    %cst = arith.constant 2.000000e-01 : f32
    %26 = vector.broadcast %cst : f32 to vector<2x128xf32>
    %27 = arith.mulf %25, %26 : vector<2x128xf32>
    %28 = arith.subf %0, %27 : vector<2x128xf32>
    %c0_5 = arith.constant 0 : index
    %c0_6 = arith.constant 0 : index
    %29 = vector.load %arg3[%c0_5, %c0_6] : memref<2x128xf32, #tpu.memory_space<vmem>>, vector<2x128xf32>
    tpu.vector_store %arg3[%c0_5, %c0_6], %27 {strides = array<i32>} : memref<2x128xf32, #tpu.memory_space<vmem>>, vector<2x128xf32>,
    %c0_7 = arith.constant 0 : index
    %c0_8 = arith.constant 0 : index
    %30 = vector.load %arg2[%c0_7, %c0_8] : memref<2x128xf32, #tpu.memory_space<vmem>>, vector<2x128xf32>
    tpu.vector_store %arg2[%c0_7, %c0_8], %28 {strides = array<i32>} : memref<2x128xf32, #tpu.memory_space<vmem>>, vector<2x128xf32>,
    return
  }
  func.func @transform_0(%arg0: i32) -> (i32, i32) {
    %c0_i32 = arith.constant 0 : i32
    %c0_i32_0 = arith.constant 0 : i32
    return %arg0, %c0_i32 : i32, i32
  }
  func.func @transform_1(%arg0: i32) -> (i32, i32) {
    %c0_i32 = arith.constant 0 : i32
    %c0_i32_0 = arith.constant 0 : i32
    return %arg0, %c0_i32 : i32, i32
  }
  func.func @transform_2(%arg0: i32) -> (i32, i32) {
    %c0_i32 = arith.constant 0 : i32
    %c0_i32_0 = arith.constant 0 : i32
    return %arg0, %c0_i32 : i32, i32
  }
}

</mosaic_0001>

<bundles_post_ra>
// kernel: tpu_custom_call.1
= control target key start
LH: loop header
LB: loop body
LE: loop exit
PB: predicated region body
PF: predicated region fallthrough
CT: control target
= control target key end

     0   :  { %8 = vsyncpa [#allocation3], 0  ;;  %s200_s0 = inlined_call_operand.hbm [shape: f32[2,128], index: 0, kind: input, shape index: {}]   ;;  %s201_s1 = inlined_call_operand.hbm [shape: f32[2,128], index: 1, kind: output, shape index: {0}]   ;;  %s202_s2 = inlined_call_operand.hbm [shape: f32[2,128], index: 2, kind: output, shape index: {1}]  }
   0x1   :  { %9 = vsyncpa [#allocation4], 0 }
   0x2   :  { %10 = vsyncpa [#allocation7], 0  ;;  %s16_s11 = sshll.u32 %s200_s0, 4  ;;  %s171_s12 = smov [#allocation2]   ;;  %s17_s11 = int_to_ptr.hbm [resolvable:$true] %s16_s11 }
   0x3   :  { %s18_s13 = sshll.u32 %s171_s12, 4  ;;  %s19_s13 = int_to_ptr.vmem [resolvable:$true] %s18_s13 }
   0x4   :  { %21 = dma.hbm_to_vmem [thread:$0]  %s17_s11, 32, %s19_s13, [#allocation3]  }
   0x5   :  { %165 = dma.done.wait [#allocation3], 32  }
   0x6   :  { %166 = vsyncadd [#allocation3], 4294967264  ;;  %v26_v0 = vld [vmem:[#allocation2] sm:$0x3]  ;;  %s172_s14 = smov 120   ;;  %s173_s15 = smov 8   ;;  %v27_v1 = vlaneseq }
   0x7   :  { %31 = vrot.lane.b32.xlu0 %v26_v0, %s172_s14  ;;  %s174_s0 = smov [#allocation6]   ;;  %s73_s19 = sshll.u32 %s202_s2, 4  ;;  %s74_s19 = int_to_ptr.hbm [resolvable:$true] %s73_s19 }
   0x8   :  { %v28_v2 = vand.u32 127, %v27_v1  ;;  %s71_s16 = sshll.u32 %s174_s0, 4  ;;  %s175_s20 = smov [#allocation5]   ;;  %s72_s16 = int_to_ptr.vmem [resolvable:$true] %s71_s16 }
   0x9   :  { %s60_s21 = sshll.u32 %s175_s20, 4  ;;  %s62_s24 = sshll.u32 %s201_s1, 4  ;;  %s61_s21 = int_to_ptr.vmem [resolvable:$true] %s60_s21  ;;  %s63_s24 = int_to_ptr.hbm [resolvable:$true] %s62_s24 }
   0xa   :  { %vm29_vm0 = vcmp.lt.s32.totalorder %v28_v2, 120  ;;  %vm30_vm1 = vcmp.ge.s32.totalorder %v28_v2, 8 }
   0xf   :  { %36 = vrot.lane.b32.xlu0 %v26_v0, %s173_s15 }
  0x79   :  { %v32_v3 = vpop.permute.xlu0 %31 }
  0x7a   :  { %v35_v4 = vsel %vm29_vm0, %v32_v3, %v26_v0 }
  0x7b   :  { %43 = vrot.lane.b32.xlu1 %v35_v4, %s172_s14  ;;  %v41_v5 = vadd.f32 %v35_v4, %v26_v0 }
  0x81   :  { %v37_v6 = vpop.permute.xlu0 %36 }
  0x82   :  { %v40_v7 = vsel %vm30_vm1, %v37_v6, %v26_v0 }
  0x83   :  { %46 = vrot.lane.b32.xlu1 %v40_v7, %s173_s15  ;;  %v42_v8 = vadd.f32 %v41_v5, %v40_v7 }
  0xed   :  { %v44_v9 = vpop.permute.xlu1 %43 }
  0xee   :  { %v45_v10 = vsel %vm29_vm0, %v44_v9, %v26_v0 }
  0xef   :  { %v49_v11 = vadd.f32 %v45_v10, %v42_v8 }
  0xf5   :  { %v47_v12 = vpop.permute.xlu1 %46 }
  0xf6   :  { %v48_v13 = vsel %vm30_vm1, %v47_v12, %v26_v0 }
  0xf7   :  { %v50_v14 = vadd.f32 %v49_v11, %v48_v13 }
  0xf9   :  { %v51_v15 = vmul.f32 0.2, %v50_v14 }
  0xfb   :  { %v52_v16 = vsub.f32 %v26_v0, %v51_v15  ;;  %53 = vst [vmem:[#allocation6] sm:$0x3] %v51_v15 }
  0xfc   :  { %76 = dma.vmem_to_hbm [thread:$0]  %s72_s16, 32, %s74_s19, [#allocation7]  }
  0xfd   :  { %54 = vst [vmem:[#allocation5] sm:$0x3] %v52_v16 }
  0xfe   :  { %65 = dma.vmem_to_hbm [thread:$0]  %s61_s21, 32, %s63_s24, [#allocation4]  }
  0xff   :  { %167 = dma.done.wait [#allocation4], 32  }
 0x100   :  { %168 = vsyncadd [#allocation4], 4294967264 }
 0x101   :  { %169 = dma.done.wait [#allocation7], 32  }
 0x102   :  { %170 = vsyncadd [#allocation7], 4294967264 }
 0x103   :  { %85 = vsyncpa [#allocation3], 1 }
 0x104   :  { %86 = vsyncpa [#allocation4], 1 }
 0x105   :  { %87 = vsyncpa [#allocation7], 1 }

</bundles_post_ra>
